<compile_context>
chip_gen: v7x
topology: tpu7x:2x2x1
jax: 0.10.0
libtpu: 0.0.40
codegen_flags: <defaults>
</compile_context>

<pallas_src>
import functools

import jax
import jax.numpy as jnp
import numpy as np
from jax import lax
from jax.experimental import pallas as pl
from jax.experimental.pallas import tpu as pltpu


def _round_up(n, m):
    return ((n + m - 1) // m) * m


def _elu(v):
    # ELU(alpha=1). min() keeps exp() finite on the positive (dead) branch.
    return jnp.where(v > 0, v, jnp.exp(jnp.minimum(v, 0.0)) - 1.0)


def _cnn_temp_kernel(x_ref, p_ref, out_ref, *, B, T, L, pad, CP, FP, D):
    """Whole batch in one invocation, lane-dense output.

    x_ref  : (CP, B*T)   rows 0..C-1 = x[b, c, t] at column b*T + t,
                         row C = ones (bias passthrough), remaining rows = 0
    p_ref  : (RP, 128)   [0:FP,  0:L*CP] folded conv weights (+bias column)
                         [FP:FP+D, 0:FP] linear weights (+bias column)
    out_ref: (D, B*T)    column index = b*T + t
    """
    BT = B * T
    K = L * CP

    xp = x_ref[...]                                            # (CP, BT)

    # Per-column time index t = col % T; masks must not cross batch edges.
    col = lax.broadcasted_iota(jnp.int32, (1, BT), 1)
    t_of_col = col % T                                         # (1, BT)

    # im2col slabs: slab_k[r, col] = xp[r, col + (k - pad)], zero in the halo.
    # roll goes to the XLU slot; each slab costs one compare + one select and
    # is a full (8,128) tile, so the sublane stack below is tile-aligned.
    slabs = []
    for k in range(L):
        off = k - pad
        if off == 0:
            slabs.append(xp)                                   # ones row intact
            continue
        rolled = pltpu.roll(xp, shift=(-off) % BT, axis=1)     # [:, c] = xp[:, c+off]
        if off < 0:
            mask = t_of_col >= (-off)
        else:
            mask = t_of_col < (T - off)
        slabs.append(jnp.where(mask, rolled, 0.0))
    slab = jnp.concatenate(slabs, axis=0)                      # (L*CP, BT)

    p = p_ref[...]
    w1 = p[:FP, :K]                                            # (FP, L*CP)
    w2 = p[FP:FP + D, :FP]                                     # (D, FP)

    # temporal conv + BN1 + spatial conv + BN2 folded into one matmul; the
    # conv bias enters through the ones row of xp (weight column pad*CP + C),
    # and row F of w1 passes that ones row through to y for the linear bias.
    y = jnp.dot(w1, slab, preferred_element_type=jnp.float32)  # (FP, BT)
    y = _elu(y)                                                # ELU(1)=1, ELU(0)=0

    # Linear over the filter axis (+ bias via y's ones row) + ELU
    z = jnp.dot(w2, y, preferred_element_type=jnp.float32)     # (D, BT)
    z = _elu(z)

    out_ref[...] = z.astype(out_ref.dtype)


def cnn_temp_forward(x, params, *, L, C, CP, FP, D):
    """x: (B, C, T) float32 -> (B, D, T) float32."""
    B, C_in, T = x.shape
    assert C_in == C
    BT = B * T
    pad = L // 2

    # Lane-dense input packing: rows 0..C-1 = channels, row C = ones (bias
    # passthrough), remaining rows zero -> exactly one (8,128) tile per tap.
    x_cbt = jnp.transpose(x, (1, 0, 2)).reshape(C, BT)
    x_packed = jnp.concatenate(
        [x_cbt,
         jnp.ones((1, BT), x.dtype),
         jnp.zeros((CP - C - 1, BT), x.dtype)], axis=0)        # (CP, BT)

    kernel = functools.partial(_cnn_temp_kernel, B=B, T=T, L=L, pad=pad,
                               CP=CP, FP=FP, D=D)

    # Single invocation (no grid): whole arrays land in VMEM, 2 input DMAs.
    out_flat = pl.pallas_call(
        kernel,
        out_shape=jax.ShapeDtypeStruct((D, BT), jnp.float32),
    )(x_packed, params)

    # Layout plumbing back to the module's (B, D, T).  Consumers that accept
    # the (D, B*T) layout can use out_flat directly and skip this.
    return out_flat.reshape(D, B, T).transpose(1, 0, 2)


def fold_and_pack_params(wt, ws, g1, be1, m1, v1, g2, be2, m2, v2, wl, bl,
                         *, eps=1e-5, CP=8):
    """Fold eval-mode BN1/BN2 + spatial conv into the temporal conv, fold both
    biases into the matmuls via a ones row, and pack everything into a single
    lane-dense float32 array."""
    f64 = np.float64
    wt = np.asarray(wt, f64); ws = np.asarray(ws, f64)
    g1, be1, m1, v1 = (np.asarray(a, f64) for a in (g1, be1, m1, v1))
    g2, be2, m2, v2 = (np.asarray(a, f64) for a in (g2, be2, m2, v2))
    wl = np.asarray(wl, f64); bl = np.asarray(bl, f64)

    F, _, _, L = wt.shape
    C = ws.shape[2]
    D = wl.shape[0]
    pad = L // 2

    scale1 = g1 / np.sqrt(v1 + eps)
    shift1 = be1 - m1 * scale1
    scale2 = g2 / np.sqrt(v2 + eps)
    shift2 = be2 - m2 * scale2

    wt_fl = wt[:, 0, 0, :]                                     # (F, L)
    ws_ffc = ws[:, :, :, 0]                                    # (F, F, C)
    # w_comb[o, l, c] = scale2[o] * sum_f ws[o,f,c] * scale1[f] * wt[f,l]
    w_comb = np.einsum('o,ofc,f,fl->olc', scale2, ws_ffc, scale1, wt_fl)
    b_comb = scale2 * np.einsum('ofc,f->o', ws_ffc, shift1) + shift2

    FP = _round_up(F + 1, 8)            # conv filters + ones-passthrough row
    K = L * CP
    RP = _round_up(FP + D, 8)
    LANES = _round_up(max(K, FP, F + 1), 128)

    params = np.zeros((RP, LANES), np.float32)
    # folded conv weights: column k*CP + c multiplies x[b, c, t + k - pad]
    for k in range(L):
        params[:F, k * CP:k * CP + C] = w_comb[:, k, :]
    params[:F, pad * CP + C] = b_comb     # conv bias hits x's ones row
    params[F, pad * CP + C] = 1.0         # passes the ones row through to y
    # linear layer: columns 0..F-1 = weight, column F = bias (hits y's ones row)
    params[FP:FP + D, :F] = wl
    params[FP:FP + D, F] = bl

    meta = dict(F=F, FP=FP, D=D, C=C, L=L, CP=CP)
    return (jnp.asarray(params), meta,
            scale1.astype(np.float32), shift1.astype(np.float32),
            scale2.astype(np.float32), shift2.astype(np.float32))


def reference_forward(x, wt, ws, scale1, shift1, scale2, shift2, wl, bl, pad):
    """Pure-JAX reference mirroring the PyTorch forward (eval-mode BN)."""
    hi = lax.Precision.HIGHEST
    xb = x[:, None, :, :]                                              # (B,1,C,T)
    y = lax.conv_general_dilated(
        xb, wt, (1, 1), [(0, 0), (pad, pad)],
        dimension_numbers=("NCHW", "OIHW", "NCHW"), precision=hi)      # (B,F,C,T)
    y = y * scale1[None, :, None, None] + shift1[None, :, None, None]
    y = lax.conv_general_dilated(
        y, ws, (1, 1), [(0, 0), (0, 0)],
        dimension_numbers=("NCHW", "OIHW", "NCHW"), precision=hi)      # (B,F,1,T)
    y = y * scale2[None, :, None, None] + shift2[None, :, None, None]
    y = jnp.squeeze(y, axis=2)                                         # (B,F,T)
    y = _elu(y)
    y = jnp.transpose(y, (0, 2, 1))                                    # (B,T,F)
    y = jnp.einsum("btf,df->btd", y, wl, precision=hi) + bl            # (B,T,D)
    y = _elu(y)
    return jnp.transpose(y, (0, 2, 1))                                 # (B,D,T)


if __name__ == "__main__":
    # Shapes consistent with CNN_Temp(n_time_samples=64, n_channels=4,
    # n_temporal_filters=8, combine_with_spectrogram=True)
    B, C, T, F = 2, 4, 64, 8
    D = F                                   # combine_with_spectrogram=True -> downsample = F
    L = int(T * 0.1)
    L = L - 1 if L % 2 == 0 else L          # -> 5
    pad = L // 2
    eps = 1e-5

    keys = jax.random.split(jax.random.PRNGKey(0), 13)

    x = jax.random.normal(keys[0], (B, C, T), jnp.float32)

    # torch-layout parameters (deterministic synthetic init)
    wt = (0.3 * jax.random.normal(keys[1], (F, 1, 1, L))).astype(jnp.float32)   # temporal_conv.weight
    ws = (0.2 * jax.random.normal(keys[2], (F, F, C, 1))).astype(jnp.float32)   # spatial_conv.weight
    g1 = (1.0 + 0.1 * jax.random.normal(keys[3], (F,))).astype(jnp.float32)     # bn1 gamma
    be1 = (0.1 * jax.random.normal(keys[4], (F,))).astype(jnp.float32)          # bn1 beta
    m1 = (0.05 * jax.random.normal(keys[5], (F,))).astype(jnp.float32)          # bn1 running_mean
    v1 = (1.0 + 0.1 * jnp.abs(jax.random.normal(keys[6], (F,)))).astype(jnp.float32)
    g2 = (1.0 + 0.1 * jax.random.normal(keys[7], (F,))).astype(jnp.float32)
    be2 = (0.1 * jax.random.normal(keys[8], (F,))).astype(jnp.float32)
    m2 = (0.05 * jax.random.normal(keys[9], (F,))).astype(jnp.float32)
    v2 = (1.0 + 0.1 * jnp.abs(jax.random.normal(keys[10], (F,)))).astype(jnp.float32)
    wl = (0.3 * jax.random.normal(keys[11], (D, F))).astype(jnp.float32)        # linear.weight
    bl = (0.1 * jax.random.normal(keys[12], (D,))).astype(jnp.float32)          # linear.bias

    params, meta, scale1, shift1, scale2, shift2 = fold_and_pack_params(
        wt, ws, g1, be1, m1, v1, g2, be2, m2, v2, wl, bl, eps=eps)

    fwd = jax.jit(functools.partial(
        cnn_temp_forward, L=L, C=C, CP=meta["CP"], FP=meta["FP"], D=meta["D"]))
    out = jax.block_until_ready(fwd(x, params))

    ref = jax.block_until_ready(
        reference_forward(x, wt, ws, jnp.asarray(scale1), jnp.asarray(shift1),
                          jnp.asarray(scale2), jnp.asarray(shift2), wl, bl, pad))

    assert out.shape == (B, D, T), out.shape
    np.testing.assert_allclose(np.asarray(out), np.asarray(ref), rtol=2e-3, atol=2e-3)

    print("KERNEL_OK")
</pallas_src>

<mosaic_0001>
module attributes {stable_mosaic.version = 11 : i64} {
  func.func @_cnn_temp_kernel(%arg0: memref<8x128xf32, #tpu.memory_space<vmem>>, %arg1: memref<24x128xf32, #tpu.memory_space<vmem>>, %arg2: memref<8x128xf32, #tpu.memory_space<vmem>>) attributes {dimension_semantics = [], scalar_prefetch = 0 : i64, scratch_operands = 0 : i64, tpu.core_type = #tpu.core_type<tc>} {
    %c0 = arith.constant 0 : index
    %c0_0 = arith.constant 0 : index
    %0 = vector.load %arg0[%c0, %c0_0] : memref<8x128xf32, #tpu.memory_space<vmem>>, vector<8x128xf32>
    %1 = tpu.iota {dimensions = array<i32: 1>} : vector<1x128xi32>
    %c64_i32 = arith.constant 64 : i32
    %c0_i32 = arith.constant 0 : i32
    %2 = arith.cmpi eq, %c64_i32, %c0_i32 : i32
    %c1_i32 = arith.constant 1 : i32
    %3 = arith.select %2, %c1_i32, %c64_i32 : i32
    %4 = vector.broadcast %3 : i32 to vector<1x128xi32>
    %5 = arith.remsi %1, %4 : vector<1x128xi32>
    %c0_i32_1 = arith.constant 0 : i32
    %6 = vector.broadcast %c0_i32_1 : i32 to vector<1x128xi32>
    %7 = arith.cmpi ne, %5, %6 : vector<1x128xi32>
    %c0_i32_2 = arith.constant 0 : i32
    %8 = vector.broadcast %c0_i32_2 : i32 to vector<1x128xi32>
    %9 = arith.cmpi slt, %5, %8 : vector<1x128xi32>
    %c0_i32_3 = arith.constant 0 : i32
    %10 = arith.cmpi slt, %3, %c0_i32_3 : i32
    %11 = vector.broadcast %10 : i1 to vector<1x128xi1>
    %12 = vector.broadcast %11 : vector<1x128xi1> to vector<1x128xi1>
    %13 = arith.xori %9, %12 : vector<1x128xi1>
    %14 = arith.andi %13, %7 : vector<1x128xi1>
    %15 = vector.broadcast %3 : i32 to vector<1x128xi32>
    %16 = arith.addi %5, %15 : vector<1x128xi32>
    %17 = arith.select %14, %16, %5 : vector<1x128xi1>, vector<1x128xi32>
    %c2_i32 = arith.constant 2 : i32
    %18 = tpu.dynamic_rotate %0 by %c2_i32 dim 1 : vector<8x128xf32>, i32 -> vector<8x128xf32>
    %c2_i32_4 = arith.constant 2 : i32
    %19 = vector.broadcast %c2_i32_4 : i32 to vector<1x128xi32>
    %20 = arith.cmpi sge, %17, %19 : vector<1x128xi32>
    %cst = arith.constant 0.000000e+00 : f32
    %21 = vector.shape_cast %20 : vector<1x128xi1> to vector<1x128xi1>
    %22 = vector.broadcast %21 : vector<1x128xi1> to vector<8x128xi1>
    %23 = vector.broadcast %cst : f32 to vector<8x128xf32>
    %24 = arith.select %22, %18, %23 : vector<8x128xi1>, vector<8x128xf32>
    %c1_i32_5 = arith.constant 1 : i32
    %25 = tpu.dynamic_rotate %0 by %c1_i32_5 dim 1 : vector<8x128xf32>, i32 -> vector<8x128xf32>
    %c1_i32_6 = arith.constant 1 : i32
    %26 = vector.broadcast %c1_i32_6 : i32 to vector<1x128xi32>
    %27 = arith.cmpi sge, %17, %26 : vector<1x128xi32>
    %cst_7 = arith.constant 0.000000e+00 : f32
    %28 = vector.shape_cast %27 : vector<1x128xi1> to vector<1x128xi1>
    %29 = vector.broadcast %28 : vector<1x128xi1> to vector<8x128xi1>
    %30 = vector.broadcast %cst_7 : f32 to vector<8x128xf32>
    %31 = arith.select %29, %25, %30 : vector<8x128xi1>, vector<8x128xf32>
    %c127_i32 = arith.constant 127 : i32
    %32 = tpu.dynamic_rotate %0 by %c127_i32 dim 1 : vector<8x128xf32>, i32 -> vector<8x128xf32>
    %c63_i32 = arith.constant 63 : i32
    %33 = vector.broadcast %c63_i32 : i32 to vector<1x128xi32>
    %34 = arith.cmpi slt, %17, %33 : vector<1x128xi32>
    %cst_8 = arith.constant 0.000000e+00 : f32
    %35 = vector.shape_cast %34 : vector<1x128xi1> to vector<1x128xi1>
    %36 = vector.broadcast %35 : vector<1x128xi1> to vector<8x128xi1>
    %37 = vector.broadcast %cst_8 : f32 to vector<8x128xf32>
    %38 = arith.select %36, %32, %37 : vector<8x128xi1>, vector<8x128xf32>
    %c126_i32 = arith.constant 126 : i32
    %39 = tpu.dynamic_rotate %0 by %c126_i32 dim 1 : vector<8x128xf32>, i32 -> vector<8x128xf32>
    %c62_i32 = arith.constant 62 : i32
    %40 = vector.broadcast %c62_i32 : i32 to vector<1x128xi32>
    %41 = arith.cmpi slt, %17, %40 : vector<1x128xi32>
    %cst_9 = arith.constant 0.000000e+00 : f32
    %42 = vector.shape_cast %41 : vector<1x128xi1> to vector<1x128xi1>
    %43 = vector.broadcast %42 : vector<1x128xi1> to vector<8x128xi1>
    %44 = vector.broadcast %cst_9 : f32 to vector<8x128xf32>
    %45 = arith.select %43, %39, %44 : vector<8x128xi1>, vector<8x128xf32>
    %46 = tpu.concatenate %24, %31, %0, %38, %45 in 0 : vector<8x128xf32>, vector<8x128xf32>, vector<8x128xf32>, vector<8x128xf32>, vector<8x128xf32> -> vector<40x128xf32>
    %c0_10 = arith.constant 0 : index
    %c0_11 = arith.constant 0 : index
    %47 = vector.load %arg1[%c0_10, %c0_11] : memref<24x128xf32, #tpu.memory_space<vmem>>, vector<24x128xf32>
    %48 = vector.extract_strided_slice %47 {offsets = [0, 0], sizes = [16, 40], strides = [1, 1]} : vector<24x128xf32> to vector<16x40xf32>
    %49 = vector.extract_strided_slice %47 {offsets = [16, 0], sizes = [8, 16], strides = [1, 1]} : vector<24x128xf32> to vector<8x16xf32>
    %cst_12 = arith.constant dense<0.000000e+00> : vector<16x128xf32>
    %50 = tpu.matmul %48, %46, %cst_12 {dimension_numbers = #tpu.dot_dimension_numbers<[1], [0], [0], [1], [0, 0, 1, 1], [], []>} : vector<16x40xf32>, vector<40x128xf32>, vector<16x128xf32> -> vector<16x128xf32>
    %cst_13 = arith.constant 0.000000e+00 : f32
    %51 = vector.broadcast %cst_13 : f32 to vector<16x128xf32>
    %52 = arith.cmpf ogt, %50, %51 : vector<16x128xf32>
    %cst_14 = arith.constant 0.000000e+00 : f32
    %53 = vector.broadcast %cst_14 : f32 to vector<16x128xf32>
    %54 = arith.minimumf %50, %53 : vector<16x128xf32>
    %55 = math.exp %54 : vector<16x128xf32>
    %cst_15 = arith.constant 1.000000e+00 : f32
    %56 = vector.broadcast %cst_15 : f32 to vector<16x128xf32>
    %57 = arith.subf %55, %56 : vector<16x128xf32>
    %58 = arith.select %52, %50, %57 : vector<16x128xi1>, vector<16x128xf32>
    %cst_16 = arith.constant dense<0.000000e+00> : vector<8x128xf32>
    %59 = tpu.matmul %49, %58, %cst_16 {dimension_numbers = #tpu.dot_dimension_numbers<[1], [0], [0], [1], [0, 0, 1, 1], [], []>} : vector<8x16xf32>, vector<16x128xf32>, vector<8x128xf32> -> vector<8x128xf32>
    %cst_17 = arith.constant 0.000000e+00 : f32
    %60 = vector.broadcast %cst_17 : f32 to vector<8x128xf32>
    %61 = arith.cmpf ogt, %59, %60 : vector<8x128xf32>
    %cst_18 = arith.constant 0.000000e+00 : f32
    %62 = vector.broadcast %cst_18 : f32 to vector<8x128xf32>
    %63 = arith.minimumf %59, %62 : vector<8x128xf32>
    %64 = math.exp %63 : vector<8x128xf32>
    %cst_19 = arith.constant 1.000000e+00 : f32
    %65 = vector.broadcast %cst_19 : f32 to vector<8x128xf32>
    %66 = arith.subf %64, %65 : vector<8x128xf32>
    %67 = arith.select %61, %59, %66 : vector<8x128xi1>, vector<8x128xf32>
    %c0_20 = arith.constant 0 : index
    %c0_21 = arith.constant 0 : index
    %68 = vector.load %arg2[%c0_20, %c0_21] : memref<8x128xf32, #tpu.memory_space<vmem>>, vector<8x128xf32>
    tpu.vector_store %arg2[%c0_20, %c0_21], %67 {strides = array<i32>} : memref<8x128xf32, #tpu.memory_space<vmem>>, vector<8x128xf32>,
    return
  }
}

</mosaic_0001>

<bundles_post_ra>
// kernel: cnn_temp_forward.1
= control target key start
LH: loop header
LB: loop body
LE: loop exit
PB: predicated region body
PF: predicated region fallthrough
CT: control target
= control target key end

     0   :  { %s301_s11 = smov 2   ;;  %s302_s12 = smov 127   ;;  %vm53_vm0 = vcmask 326656   ;;  %v12_v2 = vlaneseq  ;;  %vm305_vm5 = vmmov 1   ;;  %v306_v12 = vmov 0.0|0.0   ;;  %s341_s0 = inlined_call_operand.vmem [shape: f32[8,128], index: 0, kind: input, shape index: {}]   ;;  %s342_s1 = inlined_call_operand.vmem [shape: f32[24,128], index: 1, kind: input, shape index: {}]   ;;  %s343_s2 = inlined_call_operand.vmem [shape: f32[8,128], index: 2, kind: output, shape index: {}]  }
   0x1   :  { %v11_v0 = vld [vmem:[%s341_s0] sm:$0xff]  ;;  %s303_s15 = smov 1   ;;  %s304_s16 = smov 126   ;;  %v51_v11 = vld [vmem:[%s342_s1 + $0x8] sm:$0xff]  ;;  %284 = vmatprep.subr.bf16.mxu1 %v306_v12  ;;  %vm307_vm8 = vmmov 0   ;;  %v308_v13 = vmov 0.0  }
   0x2   :  { %26 = vrot.lane.b32.xlu0 %v11_v0, %s301_s11  ;;  %38 = vrot.lane.b32.xlu1 %v11_v0, %s302_s12  ;;  %v50_v1 = vld [vmem:[%s342_s1] sm:$0xff]  ;;  %v13_v3 = vand.u32 127, %v12_v2  ;;  %v52_v27 = vld [vmem:[%s342_s1 + $0x10] sm:$0xff]  ;;  %vm147_vm11 = vcmask 130048  }
   0x3   :  { %262 = vmatprep.mubr.msk.f32.mxu0 %vm53_vm0, %v50_v1  ;;  %269 = vmatprep.mubr.msk.f32.mxu1 %vm307_vm8, %v308_v13 }
   0x4   :  { %v18_v4 = vand.u32 63, %v13_v3 }
   0x6   :  { %32 = vrot.lane.b32.xlu0 %v11_v0, %s303_s15  ;;  %44 = vrot.lane.b32.xlu1 %v11_v0, %s304_s16  ;;  %vm28_vm1 = vcmp.ge.s32.totalorder %v18_v4, 2  ;;  %vm34_vm2 = vcmp.ge.s32.totalorder %v18_v4, 1  ;;  %vm40_vm3 = vcmp.lt.s32.totalorder %v18_v4, 63  ;;  %vm46_vm7 = vcmp.lt.s32.totalorder %v18_v4, 62 }
   0x7   :  { %vm273_vm4 = vmpackc.low %vm34_vm2, %vm28_vm1 }
   0x8   :  { %vm279_vm6 = vmpackc.low %vm40_vm3, %vm305_vm5 }
  0x74   :  { %v27_v5 = vpop.permute.xlu0 %26  ;;  %v39_v6 = vpop.permute.xlu1 %38 }
  0x75   :  { %v278_v9 = vpack.c.bf16 %v39_v6, %v11_v0 }
  0x78   :  { %v33_v7 = vpop.permute.xlu0 %32  ;;  %v45_v10 = vpop.permute.xlu1 %44 }
  0x79   :  { %v272_v8 = vpack.c.bf16 %v33_v7, %v27_v5 }
  0x7b   :  { %274 = vmatprep.subr.msk.bf16.mxu0 %vm273_vm4, %v272_v8 }
  0x7c   :  { %277 = vmatpush3.bf16.msk.msra.mxu0 %vm273_vm4, %v272_v8 }
  0x7d   :  { %280 = vmatprep.subr.msk.bf16.mxu0 %vm279_vm6, %v278_v9 }
  0x80   :  { %283 = vmatpush3.bf16.msk.msra.mxu0 %vm279_vm6, %v278_v9 }
  0x81   :  { %260 = vmatprep.subr.msk.mxu0 %vm46_vm7, %v45_v10 }
  0x84   :  { %261 = vmatpush3.msk.msra.mxu0 %vm46_vm7, %v45_v10 }
  0x85   :  { %263 = vmatmul.mubr.msk.f32.vlgmr.msra.gmra.mrb[0].mxu0 %vm53_vm0, %v51_v11 }
 0x158   :  { %v264_v14 = vpop.f32.mrb[0].mxu0 }
 0x159   :  { %v138_v15 = vmin.f32 %v264_v14, 0.0  ;;  %v126_v16 = vpop.f32.mrb[1].mxu0  ;;  %vm136_vm9 = vcmp.gt.f32.partialorder %v264_v14, 0.0 }
 0x15a   :  { %v137_v17 = vmin.f32 %v126_v16, 0.0  ;;  %vm135_vm10 = vcmp.gt.f32.partialorder %v126_v16, 0.0 }
 0x15b   :  { %v141_v18 = vmul.f32 1.442695, %v138_v15 }
 0x15c   :  { %v139_v19 = vmul.f32 1.442695, %v137_v17 }
 0x15d   :  { %295 = vpow2.f32 %v141_v18 }
 0x15e   :  { %297 = vpow2.f32 %v139_v19 }
 0x167   :  { %v296_v20 = vpop.eup %295 }
 0x168   :  { %v298_v21 = vpop.eup %297  ;;  %v239_v22 = vadd.f32 -1.0, %v296_v20 }
 0x169   :  { %v238_v23 = vadd.f32 -1.0, %v298_v21 }
 0x16a   :  { %v146_v24 = vsel %vm136_vm9, %v264_v14, %v239_v22 }
 0x16b   :  { %v145_v25 = vsel %vm135_vm10, %v126_v16, %v238_v23 }
 0x16c   :  { %v285_v26 = vpack.c.bf16 %v146_v24, %v145_v25 }
 0x16e   :  { %286 = vmatpush3.bf16.msra.mxu1 %v285_v26 }
 0x171   :  { %270 = vmatmul.mubr.msk.f32.vlgmr.msra.gmra.mrb[0].mxu1 %vm147_vm11, %v52_v27 }
 0x244   :  { %v217_v28 = vpop.f32.mrb[0].mxu1 }
 0x245   :  { %v222_v29 = vmin.f32 %v217_v28, 0.0  ;;  %v271_v30 = vpop.f32.mrb[1].mxu1  ;;  %vm221_vm12 = vcmp.gt.f32.partialorder %v217_v28, 0.0 }
 0x247   :  { %v223_v31 = vmul.f32 1.442695, %v222_v29 }
 0x249   :  { %299 = vpow2.f32 %v223_v31 }
 0x253   :  { %v300_v32 = vpop.eup %299 }
 0x254   :  { %v241_v33 = vadd.f32 -1.0, %v300_v32 }
 0x256   :  { %v226_v34 = vsel %vm221_vm12, %v217_v28, %v241_v33 }
 0x257   :  { %227 = vst [vmem:[%s343_s2] sm:$0xff] %v226_v34 }

</bundles_post_ra>
